<compile_context>
chip_gen: v7x
topology: tpu7x:2x2x1
jax: 0.10.0
libtpu: 0.0.40
codegen_flags: <defaults>
</compile_context>

<pallas_src>
import functools
import math

import jax
import jax.numpy as jnp
from jax.experimental import pallas as pl
from jax.experimental.pallas import tpu as pltpu


def bert_attention_output_kernel(hs_ref, res_ref, w_ref, b_ref, g_ref, be_ref, out_ref, *, eps):
    # hs_ref/res_ref/out_ref blocks: (1, tq, H); weights: w (H, H) bf16, b/g/be (1, H) f32.
    x = hs_ref[0].astype(jnp.bfloat16)                       # (tq, H) bf16 MXU operand
    y = jnp.dot(x, w_ref[...], preferred_element_type=jnp.float32)   # f32 accumulate
    y = y + b_ref[...]                                       # (1, H) bias broadcast

    # Dropout: eval mode -> identity.

    y = y + res_ref[0].astype(jnp.float32)                   # residual add in f32

    # LayerNorm (PyTorch: biased variance over last dim, eps=1e-12).
    mu = jnp.mean(y, axis=-1, keepdims=True)
    var = jnp.mean((y - mu) ** 2, axis=-1, keepdims=True)
    y = (y - mu) * jax.lax.rsqrt(var + eps) * g_ref[...] + be_ref[...]

    out_ref[0] = y.astype(out_ref.dtype)


def _pick_seq_tile(S):
    for t in (512, 256, 128):
        if S % t == 0:
            return t
    return S  # small / ragged S: use the full sequence as one block


def bert_attention_output(hidden_states, input_tensor, params, *, eps=1e-12):
    B, S, H = hidden_states.shape
    tq = _pick_seq_tile(S)

    w = params["w"].astype(jnp.bfloat16)      # (H, H) -> bf16 to halve DMA & feed MXU at peak
    b = params["b"].astype(jnp.float32)       # (1, H)
    g = params["gamma"].astype(jnp.float32)   # (1, H)
    be = params["beta"].astype(jnp.float32)   # (1, H)

    kernel = functools.partial(bert_attention_output_kernel, eps=eps)

    return pl.pallas_call(
        kernel,
        out_shape=jax.ShapeDtypeStruct((B, S, H), hidden_states.dtype),
        grid_spec=pltpu.PrefetchScalarGridSpec(
            num_scalar_prefetch=0,
            grid=(B, S // tq),
            in_specs=[
                pl.BlockSpec((1, tq, H), lambda bi, si: (bi, si, 0)),  # hidden_states tile
                pl.BlockSpec((1, tq, H), lambda bi, si: (bi, si, 0)),  # input_tensor (residual) tile
                pl.BlockSpec((H, H), lambda bi, si: (0, 0)),           # dense weight (grid-invariant)
                pl.BlockSpec((1, H), lambda bi, si: (0, 0)),           # dense bias
                pl.BlockSpec((1, H), lambda bi, si: (0, 0)),           # LN gamma
                pl.BlockSpec((1, H), lambda bi, si: (0, 0)),           # LN beta
            ],
            out_specs=pl.BlockSpec((1, tq, H), lambda bi, si: (bi, si, 0)),  # lane-dense output
        ),
        compiler_params=pltpu.CompilerParams(
            dimension_semantics=("parallel", "parallel"),
        ),
    )(hidden_states, input_tensor, w, b, g, be)


def init_params(key, hidden):
    # PyTorch Linear-style uniform init; LayerNorm weight=1, bias=0.
    bound = 1.0 / math.sqrt(hidden)
    kw, kb = jax.random.split(key)
    w = jax.random.uniform(kw, (hidden, hidden), jnp.float32, -bound, bound)
    b = jax.random.uniform(kb, (1, hidden), jnp.float32, -bound, bound)
    return {
        "w": w,
        "b": b,
        "gamma": jnp.ones((1, hidden), jnp.float32),
        "beta": jnp.zeros((1, hidden), jnp.float32),
    }


def _reference(hidden_states, input_tensor, params, eps=1e-12):
    y = hidden_states @ params["w"] + params["b"]
    y = y + input_tensor
    mu = jnp.mean(y, axis=-1, keepdims=True)
    var = jnp.mean((y - mu) ** 2, axis=-1, keepdims=True)
    return (y - mu) * jax.lax.rsqrt(var + eps) * params["gamma"] + params["beta"]


if __name__ == "__main__":
    # Small config consistent with the module: batch=2, seq=8, hidden=32.
    B, S, H = 2, 8, 32

    key = jax.random.PRNGKey(0)
    k_h, k_r, k_p = jax.random.split(key, 3)

    hidden_states = jax.random.normal(k_h, (B, S, H), jnp.float32)   # attention context (pre-dense)
    input_tensor = jax.random.normal(k_r, (B, S, H), jnp.float32)    # residual input
    params = init_params(k_p, H)

    out = bert_attention_output(hidden_states, input_tensor, params)
    jax.block_until_ready(out)
    assert out.shape == (B, S, H)

    # Loose tolerance: kernel matmul runs with bf16 operands (f32 accumulation).
    ref = _reference(hidden_states, input_tensor, params)
    assert jnp.allclose(out, ref, atol=1e-1, rtol=1e-1), float(jnp.max(jnp.abs(out - ref)))

    print("KERNEL_OK")
</pallas_src>

<mosaic_0001>
module attributes {stable_mosaic.version = 11 : i64} {
  func.func @bert_attention_output_kernel(%arg0: i32, %arg1: i32, %arg2: memref<1x8x32xf32, #tpu.memory_space<vmem>>, %arg3: memref<1x8x32xf32, #tpu.memory_space<vmem>>, %arg4: memref<32x32xbf16, #tpu.memory_space<vmem>>, %arg5: memref<1x32xf32, #tpu.memory_space<vmem>>, %arg6: memref<1x32xf32, #tpu.memory_space<vmem>>, %arg7: memref<1x32xf32, #tpu.memory_space<vmem>>, %arg8: memref<1x8x32xf32, #tpu.memory_space<vmem>>) attributes {dimension_semantics = [#tpu.dimension_semantics<parallel>, #tpu.dimension_semantics<parallel>], iteration_bounds = array<i64: 2, 1>, scalar_prefetch = 0 : i64, scratch_operands = 0 : i64, tpu.core_type = #tpu.core_type<tc>, window_params = [{transform_indices = @transform_0, window_bounds = array<i64: 1, 8, 32>}, {transform_indices = @transform_1, window_bounds = array<i64: 1, 8, 32>}, {pipeline_mode = #tpu.pipeline_mode<synchronous>, transform_indices = @transform_2, window_bounds = array<i64: 32, 32>}, {pipeline_mode = #tpu.pipeline_mode<synchronous>, transform_indices = @transform_3, window_bounds = array<i64: 1, 32>}, {pipeline_mode = #tpu.pipeline_mode<synchronous>, transform_indices = @transform_4, window_bounds = array<i64: 1, 32>}, {pipeline_mode = #tpu.pipeline_mode<synchronous>, transform_indices = @transform_5, window_bounds = array<i64: 1, 32>}, {transform_indices = @transform_6, window_bounds = array<i64: 1, 8, 32>}]} {
    %c0 = arith.constant 0 : index
    %c0_0 = arith.constant 0 : index
    %c0_1 = arith.constant 0 : index
    %0 = vector.load %arg2[%c0, %c0_0, %c0_1] : memref<1x8x32xf32, #tpu.memory_space<vmem>>, vector<1x8x32xf32>
    %1 = vector.shape_cast %0 : vector<1x8x32xf32> to vector<8x32xf32>
    %2 = arith.truncf %1 : vector<8x32xf32> to vector<8x32xbf16>
    %c0_2 = arith.constant 0 : index
    %c0_3 = arith.constant 0 : index
    %3 = vector.load %arg4[%c0_2, %c0_3] : memref<32x32xbf16, #tpu.memory_space<vmem>>, vector<32x32xbf16>
    %cst = arith.constant dense<0.000000e+00> : vector<8x32xf32>
    %4 = tpu.matmul %2, %3, %cst {dimension_numbers = #tpu.dot_dimension_numbers<[1], [0], [0], [1], [0, 0, 1, 1], [], []>} : vector<8x32xbf16>, vector<32x32xbf16>, vector<8x32xf32> -> vector<8x32xf32>
    %c0_4 = arith.constant 0 : index
    %c0_5 = arith.constant 0 : index
    %5 = vector.load %arg5[%c0_4, %c0_5] : memref<1x32xf32, #tpu.memory_space<vmem>>, vector<1x32xf32>
    %6 = vector.broadcast %5 : vector<1x32xf32> to vector<8x32xf32>
    %7 = arith.addf %4, %6 : vector<8x32xf32>
    %c0_6 = arith.constant 0 : index
    %c0_7 = arith.constant 0 : index
    %c0_8 = arith.constant 0 : index
    %8 = vector.load %arg3[%c0_6, %c0_7, %c0_8] : memref<1x8x32xf32, #tpu.memory_space<vmem>>, vector<1x8x32xf32>
    %9 = vector.shape_cast %8 : vector<1x8x32xf32> to vector<8x32xf32>
    %10 = arith.addf %7, %9 : vector<8x32xf32>
    %cst_9 = arith.constant dense<0.000000e+00> : vector<8xf32>
    %11 = vector.multi_reduction <add>, %10, %cst_9 [1] : vector<8x32xf32> to vector<8xf32>
    %12 = vector.shape_cast %11 : vector<8xf32> to vector<8x1xf32>
    %cst_10 = arith.constant 3.200000e+01 : f32
    %13 = vector.broadcast %cst_10 : f32 to vector<8x1xf32>
    %14 = arith.divf %12, %13 : vector<8x1xf32>
    %15 = vector.broadcast %14 : vector<8x1xf32> to vector<8x32xf32>
    %16 = arith.subf %10, %15 : vector<8x32xf32>
    %17 = arith.mulf %16, %16 : vector<8x32xf32>
    %cst_11 = arith.constant dense<0.000000e+00> : vector<8xf32>
    %18 = vector.multi_reduction <add>, %17, %cst_11 [1] : vector<8x32xf32> to vector<8xf32>
    %19 = vector.shape_cast %18 : vector<8xf32> to vector<8x1xf32>
    %cst_12 = arith.constant 3.200000e+01 : f32
    %20 = vector.broadcast %cst_12 : f32 to vector<8x1xf32>
    %21 = arith.divf %19, %20 : vector<8x1xf32>
    %22 = vector.broadcast %14 : vector<8x1xf32> to vector<8x32xf32>
    %23 = arith.subf %10, %22 : vector<8x32xf32>
    %cst_13 = arith.constant 9.99999996E-13 : f32
    %24 = vector.broadcast %cst_13 : f32 to vector<8x1xf32>
    %25 = arith.addf %21, %24 : vector<8x1xf32>
    %26 = math.rsqrt %25 : vector<8x1xf32>
    %27 = vector.broadcast %26 : vector<8x1xf32> to vector<8x32xf32>
    %28 = arith.mulf %23, %27 : vector<8x32xf32>
    %c0_14 = arith.constant 0 : index
    %c0_15 = arith.constant 0 : index
    %29 = vector.load %arg6[%c0_14, %c0_15] : memref<1x32xf32, #tpu.memory_space<vmem>>, vector<1x32xf32>
    %30 = vector.broadcast %29 : vector<1x32xf32> to vector<8x32xf32>
    %31 = arith.mulf %28, %30 : vector<8x32xf32>
    %c0_16 = arith.constant 0 : index
    %c0_17 = arith.constant 0 : index
    %32 = vector.load %arg7[%c0_16, %c0_17] : memref<1x32xf32, #tpu.memory_space<vmem>>, vector<1x32xf32>
    %33 = vector.broadcast %32 : vector<1x32xf32> to vector<8x32xf32>
    %34 = arith.addf %31, %33 : vector<8x32xf32>
    %c0_18 = arith.constant 0 : index
    %c0_19 = arith.constant 0 : index
    %c0_20 = arith.constant 0 : index
    %35 = vector.load %arg8[%c0_18, %c0_19, %c0_20] : memref<1x8x32xf32, #tpu.memory_space<vmem>>, vector<1x8x32xf32>
    %36 = vector.shape_cast %35 : vector<1x8x32xf32> to vector<8x32xf32>
    %37 = vector.shape_cast %34 : vector<8x32xf32> to vector<1x8x32xf32>
    tpu.vector_store %arg8[%c0_18, %c0_19, %c0_20], %37 {strides = array<i32>} : memref<1x8x32xf32, #tpu.memory_space<vmem>>, vector<1x8x32xf32>,
    return
  }
  func.func @transform_0(%arg0: i32, %arg1: i32) -> (i32, i32, i32) {
    %c0_i32 = arith.constant 0 : i32
    %c0_i32_0 = arith.constant 0 : i32
    return %arg0, %arg1, %c0_i32 : i32, i32, i32
  }
  func.func @transform_1(%arg0: i32, %arg1: i32) -> (i32, i32, i32) {
    %c0_i32 = arith.constant 0 : i32
    %c0_i32_0 = arith.constant 0 : i32
    return %arg0, %arg1, %c0_i32 : i32, i32, i32
  }
  func.func @transform_2(%arg0: i32, %arg1: i32) -> (i32, i32) {
    %c0_i32 = arith.constant 0 : i32
    %c0_i32_0 = arith.constant 0 : i32
    %c0_i32_1 = arith.constant 0 : i32
    return %c0_i32, %c0_i32_0 : i32, i32
  }
  func.func @transform_3(%arg0: i32, %arg1: i32) -> (i32, i32) {
    %c0_i32 = arith.constant 0 : i32
    %c0_i32_0 = arith.constant 0 : i32
    %c0_i32_1 = arith.constant 0 : i32
    return %c0_i32, %c0_i32_0 : i32, i32
  }
  func.func @transform_4(%arg0: i32, %arg1: i32) -> (i32, i32) {
    %c0_i32 = arith.constant 0 : i32
    %c0_i32_0 = arith.constant 0 : i32
    %c0_i32_1 = arith.constant 0 : i32
    return %c0_i32, %c0_i32_0 : i32, i32
  }
  func.func @transform_5(%arg0: i32, %arg1: i32) -> (i32, i32) {
    %c0_i32 = arith.constant 0 : i32
    %c0_i32_0 = arith.constant 0 : i32
    %c0_i32_1 = arith.constant 0 : i32
    return %c0_i32, %c0_i32_0 : i32, i32
  }
  func.func @transform_6(%arg0: i32, %arg1: i32) -> (i32, i32, i32) {
    %c0_i32 = arith.constant 0 : i32
    %c0_i32_0 = arith.constant 0 : i32
    return %arg0, %arg1, %c0_i32 : i32, i32, i32
  }
}

</mosaic_0001>

<bundles_post_ra>
// kernel: tpu_custom_call.1
= control target key start
LH: loop header
LB: loop body
LE: loop exit
PB: predicated region body
PF: predicated region fallthrough
CT: control target
= control target key end

     0   :  { %s1177_s0 = inlined_call_operand.hbm [shape: f32[2,8,32], index: 0, kind: input, shape index: {}]   ;;  %s1178_s1 = inlined_call_operand.hbm [shape: f32[2,8,32], index: 1, kind: input, shape index: {}]   ;;  %s1179_s2 = inlined_call_operand.hbm [shape: bf16[32,32], index: 2, kind: input, shape index: {}]   ;;  %s1180_s3 = inlined_call_operand.vmem [shape: f32[1,32], index: 3, kind: input, shape index: {}]   ;;  %s1181_s4 = inlined_call_operand.vmem [shape: f32[1,32], index: 4, kind: input, shape index: {}]   ;;  %s1182_s5 = inlined_call_operand.vmem [shape: f32[1,32], index: 5, kind: input, shape index: {}]   ;;  %s1183_s6 = inlined_call_operand.hbm [shape: f32[2,8,32], index: 6, kind: output, shape index: {}]  }
   0x1   :  { %1191 = sst [smem:[#allocation17_spill]] %s1179_s2 }
   0x2   :  { %11 = vsyncpa [#allocation3], 0 }
   0x3   :  { %13 = vsyncpa [#allocation3 + $0x1], 0 }
   0x4   :  { %14 = vsyncpa [#allocation6], 0 }
   0x5   :  { %16 = vsyncpa [#allocation6 + $0x1], 0 }
   0x6   :  { %17 = vsyncpa [#allocation4], 0 }
   0x7   :  { %19 = vsyncpa [#allocation4 + $0x1], 0  ;;  %s913_s21 = smov 0   ;;  %s915_s22 = smov 0  }
   0x8   :  { %s917_s23 = smov 0   ;;  %s919_s24 = smov 0  }
   0x9   :  { %s921_s25 = smov 0   ;;  %s923_s26 = smov 0  }
   0xa LB: > { %1192 = sst [smem:[#allocation13_spill]] %s856_s23  ;;  %s944_s27 = sadd.s32 4294967295, %s868_s26   ;;  %s868_s26 = sphi %s923_s26, %s25_s26   ;;  %s864_s25 = sphi %s921_s25, %s1215_s25   ;;  %s860_s24 = sphi %s919_s24, %s1214_s24   ;;  %s856_s23 = sphi %s917_s23, %s1213_s23   ;;  %s852_s22 = sphi %s915_s22, %s1217_s22   ;;  %s848_s21 = sphi %s913_s21, %s1216_s21  }
   0xb   : > { %1193 = sst [smem:[#allocation14_spill]] %s864_s25  ;;  %s570_s28 = sadd.s32 4294967294, %s868_s26  }
   0xc   : > { %p59_p0 = scmp.ne.s32.totalorder %s852_s22, %s848_s21  ;;  %p1184_p1 = scmp.eq.s32.totalorder %s944_s27, 0 }
   0xd   : > { %p203_p3 = scmp.eq.s32.totalorder %s570_s28, 1  ;;  %p571_p5 = scmp.ge.s32.totalorder %s868_s26, 1 }
   0xe   : > { %p953_p4 = por %p1184_p1, %p59_p0  ;;  %p210_p7 = scmp.lt.s32.totalorder %s868_s26, 3 }
   0xf   : > { %p958_p6 = por %p203_p3, %p59_p0  ;;  %s870_s8 = smov [#allocation7]  }
  0x10   : > { %s1194_s29 = scalar_select %p953_p4, 1, 0 }
  0x11   : > { %s1195_s30 = scalar_select %p958_p6, 1, 0 }
  0x12   : > { %p963_p8 = pnand %p571_p5, %p210_p7  ;;  %s222_s9 = sshll.u32 %s870_s8, 4  ;;  %s223_s9 = int_to_ptr.vmem [resolvable:$true] %s222_s9 }
  0x13   : > { %s37_s11 = sadd.s32 1, %s864_s25  ;;  %s1198_s2 = sld [smem:[#allocation17_spill]] }
  0x14   : > { %s1196_s7 = scalar_select %p963_p8, 1, 0 }
  0x15   : > { %p614_p9 = pneg %p963_p8 }
  0x17   : > { %p972_p11 = pnand %p614_p9, %p1184_p1 }
  0x19   : > { %s690_s14 = scalar_lea.hbm %s1198_s2, 256  ;;  %p692_p13 = pneg %p972_p11 }
  0x1a   : > { %p691_p12 = scmp.ne.s32.totalorder %s1198_s2, %s690_s14  ;;  %p697_p5 = scmp.lt.u32.totalorder %s690_s14, %s1198_s2 }
  0x1c   : > { %p693_p0 = pnand %p692_p13, %p691_p12 }
  0x1e   : > { %p694_p3 = pneg %p693_p0 }
  0x20   : > { %p699_p7 = pnand %p697_p5, %p694_p3 }
  0x22   : > { %702 = shalt.err (!%p699_p7)
}
  0x23   : > { %s703_s19 = scalar_lea.vmem %s223_s9, 256  ;;  %p711_p2 = scmp.lt.s32.totalorder %s223_s9, %s223_s9 }
  0x24   : > { %p704_p9 = scmp.ne.s32.totalorder %s223_s9, %s703_s19  ;;  %p712_p6 = scmp.lt.s32.totalorder %s703_s19, %s703_s19 }
  0x26   : > { %p706_p10 = pnand %p704_p9, %p692_p13  ;;  %p713_p4 = por %p712_p6, %p711_p2 }
  0x28   : > { %p707_p1 = pneg %p706_p10 }
  0x2a   : > { %p714_p8 = pnand %p713_p4, %p707_p1 }
  0x2c   : > { %717 = shalt.err (!%p714_p8)
}
  0x2d   : > { %s871_s20 = smov 64   ;;  %s872_s28 = smov 4  }
  0x2e   : > { %617 = dma.hbm_to_vmem [thread:$0]  (!%p972_p11), %s1198_s2, 256, %s223_s9, [#allocation6], %s871_s20, %s871_s20, %s872_s28  }
  0x2f   : > { %p39_p1 = scmp.ge.s32.totalorder %s37_s11, 2  ;;  %s46_s13 = sadd.s32 1, %s856_s23 }
  0x30   : > { %p53_p2 = scmp.ne.s32.totalorder %s856_s23, %s852_s22  ;;  %p54_p4 = scmp.eq.s32.totalorder %s868_s26, 0 }
  0x31   : > { %s1219_s11 = smov (%p39_p1, %s37_s11), 0  ;;  %p1201_p8 = scmp.eq.s32.totalorder %s944_s27, 1 }
  0x32   : > { %1199 = sst [smem:[#allocation15_spill]] %s1219_s11  ;;  %p999_p6 = por %p54_p4, %p53_p2 }
  0x33   : > { %p1005_p10 = por %p1201_p8, %p53_p2  ;;  %s41_s15 = ssub.s32 %s864_s25, %s1219_s11 }
  0x34   : > { %p630_p11 = scmp.lt.s32.totalorder %s868_s26, 2  ;;  %p44_p12 = scmp.eq.s32.totalorder %s41_s15, 0 }
  0x35   : > { %s1202_s10 = scalar_select %p1005_p10, 1, 0 }
  0x36   : > { %s245_s9 = sand.u32 1, %s856_s23   ;;  %s575_s18 = sshll.u32 %s864_s25, 7 }
  0x37   : > { %s1013_s16 = sshll.u32 %s245_s9, 3  ;;  %s1022_s28 = scalar_lea.hbm %s1177_s0, %s575_s18 }
  0x38   : > { %s1016_s17 = scalar_select %p44_p12, %s856_s23, %s46_s13  }
  0x39   : > { %s249_s8 = scalar_lea.vmem [#allocation2], %s1013_s16  ;;  %p1029_p13 = pnand %p630_p11, %p999_p6 }
  0x3a   : > { %1203 = sst [smem:[#allocation16_spill]] %s1016_s17  ;;  %s257_s12 = sshll.u32 %s249_s8, 4  ;;  %s1025_s12 = int_to_ptr.vmem [resolvable:$true] %s257_s12 }
  0x3b   : > { %s1036_s19 = scalar_lea.hbm %s1178_s1, %s575_s18  ;;  %s264_s20 = sand.u32 1, %s868_s26  }
  0x3c   : > { %s246_s11 = scalar_lea.sflag [#allocation3], %s245_s9  ;;  %s718_s25 = scalar_lea.hbm %s1022_s28, 128 }
  0x3d   : > { %p719_p0 = scmp.ne.s32.totalorder %s1022_s28, %s718_s25  ;;  %p720_p3 = pneg %p1029_p13 }
  0x3e   : > { %s723_s17 = scalar_lea.hbm %s1177_s0, 256  ;;  %p724_p9 = scmp.lt.u32.totalorder %s1022_s28, %s1177_s0 }
  0x3f   : > { %p721_p5 = pnand %p720_p3, %p719_p0  ;;  %p725_p1 = scmp.lt.u32.totalorder %s723_s17, %s718_s25 }
  0x40   : > { %p727_p4 = scmp.lt.u32.totalorder %s718_s25, %s1022_s28 }
  0x41   : > { %p722_p7 = pneg %p721_p5  ;;  %p726_p2 = por %p725_p1, %p724_p9 }
  0x43   : > { %p728_p6 = por %p727_p4, %p726_p2 }
  0x45   : > { %p729_p8 = pnand %p728_p6, %p722_p7 }
  0x47   : > { %732 = shalt.err (!%p729_p8)
}
  0x48   : > { %s733_s9 = scalar_lea.vmem %s1025_s12, 128  ;;  %s873_s18 = smov [#allocation2]  }
  0x49   : > { %p734_p11 = scmp.ne.s32.totalorder %s1025_s12, %s733_s9  ;;  %s738_s13 = sshll.u32 %s873_s18, 4  ;;  %s739_s13 = int_to_ptr.vmem [resolvable:$false] %s738_s13 }
  0x4a   : > { %s740_s23 = scalar_lea.vmem %s739_s13, 256  ;;  %p741_p5 = scmp.lt.s32.totalorder %s1025_s12, %s739_s13 }
  0x4b   : > { %p736_p12 = pnand %p734_p11, %p720_p3  ;;  %p742_p9 = scmp.lt.s32.totalorder %s740_s23, %s733_s9 }
  0x4d   : > { %p737_p0 = pneg %p736_p12  ;;  %p743_p1 = por %p742_p9, %p741_p5 }
  0x4f   : > { %p744_p2 = pnand %p743_p1, %p737_p0 }
  0x51   : > { %747 = shalt.err (!%p744_p2)
}
  0x52   : > { %621 = dma.hbm_to_vmem [thread:$0]  (!%p1029_p13), %s1022_s28, 128, %s1025_s12, %s246_s11  }
  0x53   : > { %s268_s25 = scalar_lea.vmem [#allocation5], %s1013_s16  ;;  %s265_s14 = scalar_lea.sflag [#allocation6], %s264_s20 }
  0x54   : > { %s276_s17 = sshll.u32 %s268_s25, 4  ;;  %s748_s8 = scalar_lea.hbm %s1036_s19, 128  ;;  %s277_s17 = int_to_ptr.vmem [resolvable:$true] %s276_s17 }
  0x55   : > { %p749_p7 = scmp.ne.s32.totalorder %s1036_s19, %s748_s8  ;;  %s753_s18 = scalar_lea.hbm %s1178_s1, 256 }
  0x56   : > { %p754_p8 = scmp.lt.u32.totalorder %s1036_s19, %s1178_s1  ;;  %p755_p11 = scmp.lt.u32.totalorder %s753_s18, %s748_s8 }
  0x57   : > { %p751_p4 = pnand %p749_p7, %p720_p3  ;;  %p757_p0 = scmp.lt.u32.totalorder %s748_s8, %s1036_s19 }
  0x58   : > { %p756_p12 = por %p755_p11, %p754_p8 }
  0x59   : > { %p752_p6 = pneg %p751_p4 }
  0x5a   : > { %p758_p5 = por %p757_p0, %p756_p12 }
  0x5c   : > { %p759_p9 = pnand %p758_p5, %p752_p6 }
  0x5e   : > { %762 = shalt.err (!%p759_p9)
}
  0x5f   : > { %s763_s11 = scalar_lea.vmem %s277_s17, 128  ;;  %s874_s16 = smov [#allocation5]  }
  0x60   : > { %p764_p1 = scmp.ne.s32.totalorder %s277_s17, %s763_s11  ;;  %s768_s28 = sshll.u32 %s874_s16, 4  ;;  %s769_s28 = int_to_ptr.vmem [resolvable:$false] %s768_s28 }
  0x61   : > { %s770_s12 = scalar_lea.vmem %s769_s28, 256  ;;  %p771_p4 = scmp.lt.s32.totalorder %s277_s17, %s769_s28 }
  0x62   : > { %p766_p2 = pnand %p764_p1, %p720_p3  ;;  %p772_p10 = scmp.lt.s32.totalorder %s770_s12, %s763_s11 }
  0x64   : > { %p767_p7 = pneg %p766_p2  ;;  %p773_p8 = por %p772_p10, %p771_p4 }
  0x66   : > { %p774_p11 = pnand %p773_p8, %p767_p7 }
  0x68   : > { %777 = shalt.err (!%p774_p11)
}
  0x69   : > { %624 = dma.hbm_to_vmem [thread:$0]  (!%p1029_p13), %s1036_s19, 128, %s277_s17, %s265_s14  }
  0x6a   : > { %p1205_p6 = scmp.ne.s32.totalorder %s1196_s7, 0 }
  0x6b   : > { %s1089_s20 = sand.u32 (!%p1205_p6), 1, %s852_s22   ;;  %p1206_p10 = scmp.ne.s32.totalorder (!%p1205_p6), %s1194_s29, 0 }
  0x6c   : > { %285 = sbr.rel (%p1205_p6) target bundleno = 674 (0x2a2), region = 44  ;;  %s1092_s25 = sshll.u32 (!%p1205_p6), %s1089_s20, 3 }
  0x6d   : > { %s288_s8 = scalar_lea.sflag (!%p1205_p6), [#allocation3], %s1089_s20  ;;  %s291_s2 = scalar_lea.vmem (!%p1205_p6), [#allocation2], %s1092_s25 }
  0x73   : > { %831 = dma.done.wait (%p1206_p10), %s288_s8, 128  }
  0x74   : > { %833 = vsyncadd (%p1206_p10), %s288_s8, 4294967168  ;;  %s296_s7 = sand.u32 1, %s944_s27   ;;  %s300_s19 = scalar_lea.vmem [#allocation5], %s1092_s25 }
  0x75   : > { %s297_s15 = scalar_lea.sflag [#allocation6], %s296_s7 }
  0x76   : > { %835 = dma.done.wait (%p1206_p10), %s297_s15, 128  }
  0x77   : > { %837 = vsyncadd (%p1206_p10), %s297_s15, 4294967168  ;;  %p1207_p13 = scmp.eq.s32.totalorder %s944_s27, 0 }
  0x79   : > { %839 = dma.done.wait (%p1207_p13), [#allocation6], 256   ;;  %p1208_p3 = pmov %p1207_p13 }
  0x7a   : > { %v875_v0 = vmov 0.0   ;;  %vm876_vm0 = vmmov 0   ;;  %v686_v1 = vld [vmem:[#allocation7] sm:$0xff]   ;;  %v687_v2 = vld [vmem:[#allocation7 + $0x8] sm:$0xff]   ;;  %vm364_vm1 = vcmask 261120   ;;  %v408_v7 = vld [vmem:[%s300_s19] sm:$0xff] }
  0x7b   : > { %841 = vsyncadd (%p1208_p3), [#allocation6], 4294967040  ;;  %596 = vmatprep.subr.bf16.mxu0 %v875_v0  ;;  %600 = vmatprep.mubr.msk.bf16.mxu0 %vm876_vm0, %v875_v0  ;;  %v339_v3 = vld [vmem:[%s291_s2] sm:$0xff]  ;;  %s590_s13 = sshll.u32 %s860_s24, 7  ;;  %s337_s23 = scalar_lea.vmem [#allocation8], %s1092_s25 }
  0x7c   : > { %597 = vmatpush3.bf16.msra.mxu0 %v686_v1  ;;  %v340_v4 = vpack.c.bf16 %v339_v3, %v339_v3  ;;  %v583_v5 = vld [vmem:[%s1180_s3] ss:$0 sm:$0xff]  ;;  %s456_s11 = sshll.u32 %s337_s23, 4  ;;  %s1127_s12 = scalar_lea.hbm %s1183_s6, %s590_s13  ;;  %s1129_s11 = int_to_ptr.vmem [resolvable:$true] %s456_s11 }
  0x7d   : > { %598 = vmatprep.subr.bf16.mxu0 %v875_v0  ;;  %v587_v23 = vld [vmem:[%s1181_s4] ss:$0 sm:$0xff]  ;;  %s442_s8 = scalar_lea.sflag [#allocation4], %s1089_s20  ;;  %s778_s2 = scalar_lea.vmem %s1129_s11, 128 }
  0x7e   : > { %v588_v25 = vld [vmem:[%s1182_s5] ss:$0 sm:$0xff]  ;;  %p779_p12 = scmp.ne.s32.totalorder %s1129_s11, %s778_s2  ;;  %p1209_p0 = scmp.ne.s32.totalorder %s1202_s10, 0 }
  0x7f   : > { %s877_s24 = smov [#allocation8]  }
  0x80   : > { %599 = vmatpush3.bf16.msra.mxu0 %v687_v2  ;;  %p780_p5 = pnand %p779_p12, %p1209_p0  ;;  %s782_s25 = sshll.u32 %s877_s24, 4  ;;  %s783_s25 = int_to_ptr.vmem [resolvable:$false] %s782_s25 }
  0x81   : > { %s784_s7 = scalar_lea.vmem %s783_s25, 256  ;;  %p785_p1 = scmp.lt.s32.totalorder %s1129_s11, %s783_s25 }
  0x82   : > { %p781_p9 = pneg %p780_p5  ;;  %p786_p2 = scmp.lt.s32.totalorder %s784_s7, %s778_s2 }
  0x83   : > { %601 = vmatmul.mubr.msk.bf16.vlgmr.msra.gmra.mrb[0].mxu0 %vm364_vm1, %v340_v4 }
  0x84   : > { %p787_p7 = por %p786_p2, %p785_p1 }
  0x86   : > { %p788_p4 = pnand %p787_p7, %p781_p9 }
 0x156   : > { %v402_v6 = vpop.f32.mrb[0].mxu0 }
 0x157   : > { %v403_v8 = vadd.f32 %v583_v5, %v402_v6  ;;  %v602_v9 = vpop.f32.mrb[1].mxu0 }
 0x158   : > { %v405_v10 = vpop.f32.mrb[2].mxu0 }
 0x159   : > { %v603_v11 = vpop.f32.mrb[3].mxu0  ;;  %v409_v12 = vadd.f32 %v408_v7, %v403_v8 }
 0x15b   : > { %v410_v13 = vsel %vm364_vm1, %v409_v12, 0.0 }
 0x15c   : > { %411 = vadd.xlane.f32.xlu0 %v410_v13 }
 0x1e9   : > { %v412_v14 = vpop.xlane.xlu0 %411 }
 0x1ea   : > { %v414_v15 = vmul.f32 0.03125, %v412_v14 }
 0x1ec   : > { %v415_v16 = vsub.f32 %v409_v12, %v414_v15 }
 0x1ee   : > { %v416_v17 = vmul.f32 %v415_v16, %v415_v16 }
 0x1f0   : > { %v417_v18 = vsel %vm364_vm1, %v416_v17, 0.0 }
 0x1f1   : > { %418 = vadd.xlane.f32.xlu0 %v417_v18 }
 0x27e   : > { %v419_v19 = vpop.xlane.xlu0 %418 }
 0x27f   : > { %v420_v20 = vmul.f32 0.03125, %v419_v19 }
 0x281   : > { %v421_v21 = vadd.f32 1e-12, %v420_v20 }
 0x283   : > { %688 = vrsqrt.f32 %v421_v21 }
 0x28d   : > { %v689_v22 = vpop.eup %688 }
 0x28e   : > { %v423_v24 = vmul.f32 %v689_v22, %v415_v16 }
 0x290   : > { %v431_v26 = vmul.f32 %v587_v23, %v423_v24 }
 0x292   : > { %v439_v27 = vadd.f32 %v588_v25, %v431_v26 }
 0x294   : > { %440 = vst.msk [vmem:[%s337_s23] sm:$0xff] %vm364_vm1, %v439_v27 }
 0x295   : > { %791 = shalt.err (!%p788_p4)
}
 0x296   : > { %s792_s20 = scalar_lea.hbm %s1127_s12, 128  ;;  %s796_s29 = scalar_lea.hbm %s1183_s6, 256 }
 0x297   : > { %p793_p8 = scmp.ne.s32.totalorder %s1127_s12, %s792_s20  ;;  %p797_p10 = scmp.lt.u32.totalorder %s1127_s12, %s1183_s6 }
 0x298   : > { %p798_p13 = scmp.lt.u32.totalorder %s796_s29, %s792_s20  ;;  %p800_p12 = scmp.lt.u32.totalorder %s792_s20, %s1127_s12 }
 0x299   : > { %p794_p11 = pnand %p793_p8, %p1209_p0 }
 0x29a   : > { %p799_p3 = por %p798_p13, %p797_p10 }
 0x29b   : > { %p795_p6 = pneg %p794_p11 }
 0x29c   : > { %p801_p5 = por %p800_p12, %p799_p3 }
 0x29e   : > { %p802_p9 = pnand %p801_p5, %p795_p6 }
 0x2a0   : > { %805 = shalt.err (!%p802_p9)
}
 0x2a1   : > { %612 = dma.vmem_to_hbm [thread:$0]  (%p1209_p0), %s1129_s11, 128, %s1127_s12, %s442_s8  }
 0x2a2 PF: > { %s468_s14 = sand.u32 1, %s848_s21   ;;  %p1210_p1 = scmp.ne.s32.totalorder %s1195_s30, 0 }
 0x2a3   : > { %p1211_p2 = scmp.ge.s32.totalorder %s868_s26, 2  ;;  %s469_s9 = scalar_lea.sflag [#allocation4], %s468_s14 }
 0x2a5   : > { %p626_p7 = pnand %p1211_p2, %p1210_p1 }
 0x2a7   : > { %843 = dma.done.wait (!%p626_p7), %s469_s9, 128  }
 0x2a8   : > { %845 = vsyncadd (!%p626_p7), %s469_s9, 4294967168  ;;  %s25_s26 = sadd.s32 1, %s868_s26   ;;  %s1212_s18 = sld [smem:[#allocation13_spill]] }
 0x2a9   : > { %p22_p4 = scmp.ge.s32.totalorder %s25_s26, 4   ;;  %s1213_s23 = sld [smem:[#allocation16_spill]] }
 0x2aa   : > { %s1214_s24 = sld [smem:[#allocation14_spill]]  ;;  %s1215_s25 = sld [smem:[#allocation15_spill]] }
 0x2ab   : > { %s1216_s21 = smov %s852_s22  ;;  %24 = sbr.rel (!%p22_p4) target bundleno = 10 (0xa), region = 106 }
 0x2ae   : > { %s1217_s22 = smov %s1212_s18 }
 0x2b2   :  { %474 = vsyncpa [#allocation3], 1 }
 0x2b3   :  { %476 = vsyncpa [#allocation3 + $0x1], 1 }
 0x2b4   :  { %477 = vsyncpa [#allocation6], 1 }
 0x2b5   :  { %479 = vsyncpa [#allocation6 + $0x1], 1 }
 0x2b6   :  { %480 = vsyncpa [#allocation4], 1 }
 0x2b7   :  { %482 = vsyncpa [#allocation4 + $0x1], 1 }

</bundles_post_ra>
